<compile_context>
chip_gen: v7x
topology: tpu7x:2x2x1
jax: 0.10.0
libtpu: 0.0.40
codegen_flags: <defaults>
</compile_context>

<pallas_src>
import functools

import jax
import jax.numpy as jnp
from jax.experimental import pallas as pl
from jax.experimental.pallas import tpu as pltpu

LANES = 128
ROW_ALIGN = 32                 # clean (sublane,128) tiling for f32/bf16/int8/fp8
MIB = 1024 * 1024
_MIN_KERNEL_BYTES = 1 * MIB    # below this, a fused XLA multiply is strictly faster


def _scale_kernel(scale_ref, x_ref, o_ref):
    # scale_ref is a (1, 1) f32 scalar in SMEM.  Compute in f32 (closer to
    # PyTorch's `x * f32_param` promotion) and cast back for the store; the
    # extra cast is free on a memory-bound kernel.
    x = x_ref[...]
    o_ref[...] = (x.astype(jnp.float32) * scale_ref[0, 0]).astype(o_ref.dtype)


@functools.lru_cache(maxsize=None)
def _tpu_hw():
    """Return (physical_vmem_bytes, multi_tensorcore_chip). Conservative defaults."""
    vmem = 64 * MIB          # conservative (v7x per-TC); v5e/v6e have 128 MiB
    multi_core = False
    try:
        info = pltpu.get_tpu_info()
        vmem = int(getattr(info, "vmem_capacity_bytes", vmem))
    except Exception:
        pass
    try:
        kind = jax.devices()[0].device_kind.lower()
        multi_core = ("v7" in kind) or ("7x" in kind)   # v7x: 2 TCs per chip
    except Exception:
        pass
    return vmem, multi_core


def _tiling(itemsize, block_bytes=None):
    """Pick (block_bytes, vmem_limit_bytes) for this generation's VMEM budget."""
    vmem, _ = _tpu_hw()
    if block_bytes is None:
        # 8 MiB blocks on 64 MiB-VMEM chips (v7x), 16 MiB on 128 MiB chips.
        block_bytes = 8 * MIB if vmem <= 64 * MIB else 16 * MIB
    # Footprint: in + out, each double-buffered -> ~4x block, plus headroom.
    vmem_limit = 4 * block_bytes + 16 * MIB
    vmem_limit = max(32 * MIB, min(vmem_limit, vmem - 8 * MIB))
    return block_bytes, vmem_limit


def _grid_semantics(grid_steps):
    """CORE_PARALLEL on multi-TC chips (v7x) so the stream uses both TCs."""
    _, multi_core = _tpu_hw()
    if multi_core and grid_steps >= 2:
        return pltpu.CORE_PARALLEL
    return "parallel"


def _scale_slab(slab, scale_2d, *, block_bytes=None, donate_input=False):
    """Run the elementwise-scale kernel over a lane-dense (rows, 128) slab."""
    rows = slab.shape[0]
    itemsize = jnp.dtype(slab.dtype).itemsize
    blk_bytes, vmem_limit = _tiling(itemsize, block_bytes)

    # Largest row-tile that stays within the block budget, 32-row aligned so
    # every supported dtype keeps unmasked (sublane, 128) vld/vst tiling.
    target_rows = max(ROW_ALIGN, (blk_bytes // (LANES * itemsize)) // ROW_ALIGN * ROW_ALIGN)
    tile_rows = min(target_rows, rows)   # full extent is always a legal block
    grid_steps = pl.cdiv(rows, tile_rows)  # partial last block is masked by Pallas

    n_elems = rows * LANES
    extra = {}
    if donate_input:
        # Caller promises the input buffer may be reused for the output.
        extra["input_output_aliases"] = {1: 0}

    return pl.pallas_call(
        _scale_kernel,
        out_shape=jax.ShapeDtypeStruct((rows, LANES), slab.dtype),
        grid=(grid_steps,),
        in_specs=[
            pl.BlockSpec(memory_space=pltpu.SMEM),                # scalar param
            pl.BlockSpec((tile_rows, LANES), lambda i: (i, 0)),   # x tile
        ],
        out_specs=pl.BlockSpec((tile_rows, LANES), lambda i: (i, 0)),
        compiler_params=pltpu.CompilerParams(
            dimension_semantics=(_grid_semantics(grid_steps),),
            vmem_limit_bytes=int(vmem_limit),
        ),
        cost_estimate=pl.CostEstimate(
            flops=int(n_elems),
            transcendentals=0,
            bytes_accessed=int(2 * n_elems * itemsize),
        ),
        **extra,
    )(scale_2d, slab)


def scale_forward(x, scale, *, min_kernel_bytes=_MIN_KERNEL_BYTES,
                  block_bytes=None, donate_input=False):
    """Elementwise x * scale implemented as a Pallas TPU kernel.

    x:     any shape / float dtype (NCHW from the PyTorch module).
    scale: shape (1,) float32 parameter (as in nn.Parameter(FloatTensor([v]))).
    Output keeps x.dtype (for f32 inputs this matches PyTorch exactly).
    """
    scale_f32 = jnp.asarray(scale, jnp.float32).reshape(-1)[0]
    n = x.size
    itemsize = jnp.dtype(x.dtype).itemsize

    # Tiny or lane-unaligned tensors: a fused XLA multiply is already at
    # roofline and avoids Pallas launch cost / prefix-slice + concat copies.
    if n == 0 or n % LANES != 0 or n * itemsize < min_kernel_bytes:
        return (x.astype(jnp.float32) * scale_f32).astype(x.dtype)

    slab = x.reshape(n // LANES, LANES)          # contiguous, copy-free reshape
    out = _scale_slab(slab, scale_f32.reshape(1, 1),
                      block_bytes=block_bytes, donate_input=donate_input)
    return out.reshape(x.shape)


class ScalePallas:
    """Mirror of the PyTorch `Scale` module with a Pallas forward."""

    def __init__(self, init_value: float = 1.0):
        # Same init semantics as nn.Parameter(torch.FloatTensor([init_value])).
        self.scale = jnp.array([init_value], dtype=jnp.float32)

    def __call__(self, x):
        return scale_forward(x, self.scale)


if __name__ == "__main__":
    key = jax.random.PRNGKey(0)
    module = ScalePallas(init_value=1.5)
    s = module.scale[0]

    # 1) Spec-sized NCHW input (2, 4, 16, 16): tiny -> fused XLA fallback path.
    x_small = jax.random.normal(key, (2, 4, 16, 16), dtype=jnp.float32)
    y_small = jax.block_until_ready(module(x_small))
    assert y_small.shape == x_small.shape and y_small.dtype == x_small.dtype
    assert jnp.allclose(y_small, x_small * s, atol=1e-6, rtol=1e-6)

    # 2) Same small input forced through the Pallas kernel (single block).
    y_forced = jax.block_until_ready(
        scale_forward(x_small, module.scale, min_kernel_bytes=0))
    assert jnp.allclose(y_forced, x_small * s, atol=1e-6, rtol=1e-6)

    # 3) Small-ish slab forced through a multi-step grid with a masked partial
    #    last block (1920 rows, 512-row tiles -> 4 grid steps).
    x_med = jax.random.normal(key, (3, 5, 128, 128), dtype=jnp.float32)
    y_med = jax.block_until_ready(
        scale_forward(x_med, module.scale, min_kernel_bytes=0,
                      block_bytes=256 * 1024))
    assert jnp.allclose(y_med, x_med * s, atol=1e-6, rtol=1e-6)

    # 4) bf16 input: kernel multiplies in f32 and casts back to bf16.
    x_bf16 = jax.random.normal(key, (2, 4, 16, 16), dtype=jnp.bfloat16)
    y_bf16 = jax.block_until_ready(
        scale_forward(x_bf16, module.scale, min_kernel_bytes=0))
    ref_bf16 = (x_bf16.astype(jnp.float32) * s).astype(jnp.bfloat16)
    assert y_bf16.dtype == jnp.bfloat16
    assert jnp.allclose(y_bf16.astype(jnp.float32), ref_bf16.astype(jnp.float32),
                        atol=1e-2, rtol=1e-2)

    print("KERNEL_OK")
</pallas_src>

<mosaic_0001>
module attributes {stable_mosaic.version = 11 : i64} {
  func.func @_scale_kernel(%arg0: i32, %arg1: memref<1x1xf32, #tpu.memory_space<smem>>, %arg2: memref<16x128xf32, #tpu.memory_space<vmem>>, %arg3: memref<16x128xf32, #tpu.memory_space<vmem>>) attributes {dimension_semantics = [#tpu.dimension_semantics<parallel>], iteration_bounds = array<i64: 1>, scalar_prefetch = 0 : i64, scratch_operands = 0 : i64, tpu.core_type = #tpu.core_type<tc>, window_params = [{transform_indices = @transform_0, window_bounds = array<i64: 1, 1>}, {transform_indices = @transform_1, window_bounds = array<i64: 16, 128>}, {transform_indices = @transform_2, window_bounds = array<i64: 16, 128>}]} {
    %c0 = arith.constant 0 : index
    %c0_0 = arith.constant 0 : index
    %0 = vector.load %arg2[%c0, %c0_0] : memref<16x128xf32, #tpu.memory_space<vmem>>, vector<16x128xf32>
    %c0_1 = arith.constant 0 : index
    %c0_2 = arith.constant 0 : index
    %1 = memref.load %arg1[%c0_1, %c0_2] : memref<1x1xf32, #tpu.memory_space<smem>>
    %2 = vector.broadcast %1 : f32 to vector<16x128xf32>
    %3 = arith.mulf %0, %2 : vector<16x128xf32>
    %c0_3 = arith.constant 0 : index
    %c0_4 = arith.constant 0 : index
    %4 = vector.load %arg3[%c0_3, %c0_4] : memref<16x128xf32, #tpu.memory_space<vmem>>, vector<16x128xf32>
    tpu.vector_store %arg3[%c0_3, %c0_4], %3 {strides = array<i32>} : memref<16x128xf32, #tpu.memory_space<vmem>>, vector<16x128xf32>,
    return
  }
  func.func @transform_0(%arg0: i32) -> (i32, i32) {
    %c0_i32 = arith.constant 0 : i32
    %c0_i32_0 = arith.constant 0 : i32
    %c0_i32_1 = arith.constant 0 : i32
    return %c0_i32, %c0_i32_0 : i32, i32
  }
  func.func @transform_1(%arg0: i32) -> (i32, i32) {
    %c0_i32 = arith.constant 0 : i32
    %c0_i32_0 = arith.constant 0 : i32
    return %arg0, %c0_i32 : i32, i32
  }
  func.func @transform_2(%arg0: i32) -> (i32, i32) {
    %c0_i32 = arith.constant 0 : i32
    %c0_i32_0 = arith.constant 0 : i32
    return %arg0, %c0_i32 : i32, i32
  }
}

</mosaic_0001>

<bundles_post_ra>
// kernel: tpu_custom_call.1
= control target key start
LH: loop header
LB: loop body
LE: loop exit
PB: predicated region body
PF: predicated region fallthrough
CT: control target
= control target key end

     0   :  { %8 = vsyncpa [#allocation4], 0  ;;  %s156_s0 = inlined_call_operand.<no memory space> [shape: f32[1,1], index: 0, kind: input, shape index: {}]   ;;  %s157_s1 = inlined_call_operand.hbm [shape: f32[16,128], index: 1, kind: input, shape index: {}]   ;;  %s158_s2 = inlined_call_operand.hbm [shape: f32[16,128], index: 2, kind: output, shape index: {}]  }
   0x1   :  { %9 = vsyncpa [#allocation5], 0  ;;  %s104_s9 = smov [#allocation3]   ;;  %s56_s13 = scalar_lea.hbm %s157_s1, 256 }
   0x2   :  { %s17_s10 = sshll.u32 %s104_s9, 4  ;;  %p57_p0 = scmp.ne.s32.totalorder %s157_s1, %s56_s13  ;;  %s18_s10 = int_to_ptr.vmem [resolvable:$true] %s17_s10 }
   0x3   :  { %p60_p1 = scmp.lt.u32.totalorder %s56_s13, %s157_s1 }
   0x5   :  { %p62_p2 = pnand %p60_p1, %p57_p0 }
   0x7   :  { %65 = shalt.err (!%p62_p2)
}
   0x8   :  { %s66_s18 = scalar_lea.vmem %s18_s10, 256  ;;  %p71_p4 = scmp.lt.s32.totalorder %s18_s10, %s18_s10 }
   0x9   :  { %p67_p3 = scmp.ne.s32.totalorder %s18_s10, %s66_s18  ;;  %p72_p5 = scmp.lt.s32.totalorder %s66_s18, %s66_s18 }
   0xb   :  { %p73_p6 = por %p72_p5, %p71_p4 }
   0xd   :  { %p74_p7 = pnand %p73_p6, %p67_p3 }
   0xf   :  { %77 = shalt.err (!%p74_p7)
}
  0x10   :  { %s105_s19 = smov 128   ;;  %s106_s20 = smov 8  }
  0x11   :  { %23 = dma.hbm_to_vmem [thread:$0]  %s157_s1, 256, %s18_s10, [#allocation4], %s105_s19, %s105_s19, %s106_s20  }
  0x12   :  { %100 = dma.done.wait [#allocation4], 256  }
  0x13   :  { %101 = vsyncadd [#allocation4], 4294967040  ;;  %v30_v0 = vstv %s156_s0  ;;  %s107_s25 = smov [#allocation6]   ;;  %v27_v1 = vld [vmem:[#allocation3] sm:$0xff]  ;;  %v28_v2 = vld [vmem:[#allocation3 + $0x8] sm:$0xff] }
  0x14   :  { %s40_s26 = sshll.u32 %s107_s25, 4  ;;  %v31_v3 = vmul.f32 %v30_v0, %v27_v1  ;;  %v32_v4 = vmul.f32 %v30_v0, %v28_v2  ;;  %s41_s26 = int_to_ptr.vmem [resolvable:$true] %s40_s26 }
  0x15   :  { %s78_s27 = scalar_lea.vmem %s41_s26, 256  ;;  %p83_p9 = scmp.lt.s32.totalorder %s41_s26, %s41_s26 }
  0x16   :  { %33 = vst [vmem:[#allocation6] sm:$0xff] %v31_v3  ;;  %34 = vst [vmem:[#allocation6 + $0x8] sm:$0xff] %v32_v4  ;;  %p79_p8 = scmp.ne.s32.totalorder %s41_s26, %s78_s27  ;;  %p84_p10 = scmp.lt.s32.totalorder %s78_s27, %s78_s27 }
  0x18   :  { %p85_p11 = por %p84_p10, %p83_p9 }
  0x1a   :  { %p86_p12 = pnand %p85_p11, %p79_p8 }
  0x1c   :  { %89 = shalt.err (!%p86_p12)
}
  0x1d   :  { %s90_s0 = scalar_lea.hbm %s158_s2, 256 }
  0x1e   :  { %p91_p13 = scmp.ne.s32.totalorder %s158_s2, %s90_s0  ;;  %p94_p0 = scmp.lt.u32.totalorder %s90_s0, %s158_s2 }
  0x20   :  { %p96_p1 = pnand %p94_p0, %p91_p13 }
  0x22   :  { %99 = shalt.err (!%p96_p1)
}
  0x23   :  { %46 = dma.vmem_to_hbm [thread:$0]  %s41_s26, 256, %s158_s2, [#allocation5], %s105_s19, %s105_s19, %s106_s20  }
  0x24   :  { %102 = dma.done.wait [#allocation5], 256  }
  0x25   :  { %103 = vsyncadd [#allocation5], 4294967040 }
  0x26   :  { %50 = vsyncpa [#allocation4], 1 }
  0x27   :  { %51 = vsyncpa [#allocation5], 1 }

</bundles_post_ra>
